<compile_context>
chip_gen: v7x
topology: tpu7x:2x2x1
jax: 0.10.0
libtpu: 0.0.40
codegen_flags: <defaults>
</compile_context>

<pallas_src>
import functools
import math

import jax
import jax.numpy as jnp
from jax.experimental import pallas as pl
from jax.experimental.pallas import tpu as pltpu

_INV_SQRT2 = 1.0 / math.sqrt(2.0)


def _gelu_exact(x):
    # exact GELU (erf), matching torch.nn.GELU(approximate='none')
    return 0.5 * x * (1.0 + jax.lax.erf(x * _INV_SQRT2))


def _gcn_kernel(adj_ref, x_ref, w_ref, b_ref, o_ref, h_acc, *, tk, n_valid, mask_k):
    # adj_ref: (1, tk, tn)   x_ref: (1, C_in, tk)   w_ref: (C_out, C_in)
    # b_ref:   (C_out, 1)    o_ref: (1, C_out, tn)  h_acc: (C_in, tn) f32
    k = pl.program_id(2)

    @pl.when(k == 0)
    def _():
        h_acc[...] = jnp.zeros_like(h_acc)

    adj = adj_ref[0]  # native dtype (f32 or bf16), (tk, tn)
    if mask_k:
        # Ragged N: the overhanging rows of the last k tile hold undefined
        # data (stale VMEM, possibly NaN/Inf) -> zero them before the dot.
        row = jax.lax.broadcasted_iota(jnp.int32, adj.shape, 0) + k * tk
        adj = jnp.where(row < n_valid, adj, jnp.zeros_like(adj))

    x = x_ref[0]  # (C_in, tk), native dtype (padded in wrapper -> no garbage)

    # inputs @ adj partial product — MXU, f32 accumulation.
    h_acc[...] += jnp.dot(
        x, adj,
        preferred_element_type=jnp.float32,
        precision=jax.lax.Precision.HIGHEST,
    )

    @pl.when(k == pl.num_programs(2) - 1)
    def _():
        h = _gelu_exact(h_acc[...])  # (C_in, tn) f32
        w = w_ref[...].astype(jnp.float32)  # (C_out, C_in), tiny
        b = b_ref[...].astype(jnp.float32)  # (C_out, 1)
        y = jnp.dot(
            w, h,
            preferred_element_type=jnp.float32,
            precision=jax.lax.Precision.HIGHEST,
        ) + b
        o_ref[0] = _gelu_exact(y).astype(o_ref.dtype)


def gcn_reference(adj, inputs, weight, bias):
    x = jnp.einsum("bcn,bnm->bcm", inputs, adj,
                   precision=jax.lax.Precision.HIGHEST)
    x = _gelu_exact(x)
    x = jnp.einsum("oc,bcn->bon", weight, x,
                   precision=jax.lax.Precision.HIGHEST) + bias[None, :, None]
    x = _gelu_exact(x)
    return x


def gcn_forward(adj, inputs, weight, bias, *, tn=None, tk=None,
                min_pallas_n=128, out_dtype=None):
    """adj: (B, N, N), inputs: (B, C_in, N), weight: (C_out, C_in), bias: (C_out,).

    Returns (B, C_out, N) in `out_dtype` (default: inputs.dtype).
    """
    B, C_in, N = inputs.shape
    assert adj.shape == (B, N, N)
    C_out, c_in_w = weight.shape
    assert c_in_w == C_in
    if out_dtype is None:
        # TODO(synk): pass bf16 here if the consumer tolerates it — halves
        # output writeback bytes on this memory-bound kernel.
        out_dtype = inputs.dtype

    # Small-N fast path: a Pallas launch (and N->128 lane padding) is pure
    # overhead for toy graphs; the adj bytes would inflate by (128/N)^2.
    if N < min_pallas_n:
        return gcn_reference(adj, inputs, weight, bias).astype(out_dtype)

    adj_itemsize = jnp.dtype(adj.dtype).itemsize
    in_itemsize = jnp.dtype(inputs.dtype).itemsize
    out_itemsize = jnp.dtype(out_dtype).itemsize

    def floor128(v):
        return max(128, (v // 128) * 128)

    # Tile defaults: lane-dense tn (>=512 hits ~85% of HBM roofline),
    # moderate tk so adj row segments stay multi-KiB; never exceed N so
    # blocks are not larger than the array dims.
    if tn is None:
        tn = min(1024, floor128(N))
    if tk is None:
        tk = min(512, floor128(N))
    tn = max(128, (tn // 128) * 128)
    tk = max(128, (tk // 128) * 128)

    # VMEM budget accounting for ALL double-buffered blocks + the f32
    # accumulator.  Scoped limit derived from the physical VMEM of the
    # running chip (v7x: 64 MiB physical -> ~48 MiB limit; v5e/v6e: 128 MiB).
    try:
        phys_vmem = int(pltpu.get_tpu_info().vmem_capacity_bytes)
    except Exception:  # pragma: no cover - conservative fallback
        phys_vmem = 64 * 1024 * 1024
    vmem_limit = min(3 * phys_vmem // 4, 96 * 1024 * 1024)
    budget = vmem_limit - 8 * 1024 * 1024

    def vmem_bytes(tk_, tn_):
        return (2 * tk_ * tn_ * adj_itemsize          # adj block, double-buffered
                + 2 * C_in * tk_ * in_itemsize        # x block
                + 2 * C_out * tn_ * out_itemsize      # out block
                + C_in * tn_ * 4)                     # f32 accumulator scratch

    while vmem_bytes(tk, tn) > budget and tn > 128:
        tn -= 128
    while vmem_bytes(tk, tn) > budget and tk > 128:
        tk -= 128

    n_j = pl.cdiv(N, tn)
    n_k = pl.cdiv(N, tk)
    mask_k = (N % tk) != 0

    # Pad only the tiny `inputs` array so every x block is fully defined
    # (zeros in the tail); the N^2 adj array is NOT padded — its ragged tail
    # is masked in-kernel instead.
    n_pad_k = n_k * tk
    if n_pad_k != N:
        inputs = jnp.pad(inputs, ((0, 0), (0, 0), (0, n_pad_k - N)))

    bias2d = bias.reshape(C_out, 1)

    cost = pl.CostEstimate(
        flops=int(2.0 * B * N * N * C_in + 2.0 * B * N * C_in * C_out),
        transcendentals=int(B * N * (C_in + C_out)),
        bytes_accessed=int(
            B * N * N * adj_itemsize
            + B * C_in * N * in_itemsize
            + B * C_out * N * out_itemsize
            + C_out * (C_in + 1) * 4
        ),
    )

    kernel = functools.partial(_gcn_kernel, tk=tk, n_valid=N, mask_k=mask_k)

    out = pl.pallas_call(
        kernel,
        out_shape=jax.ShapeDtypeStruct((B, C_out, N), out_dtype),
        grid_spec=pltpu.PrefetchScalarGridSpec(
            num_scalar_prefetch=0,
            grid=(B, n_j, n_k),
            in_specs=[
                pl.BlockSpec((1, tk, tn), lambda b, j, k: (b, k, j)),
                pl.BlockSpec((1, C_in, tk), lambda b, j, k: (b, 0, k)),
                pl.BlockSpec((C_out, C_in), lambda b, j, k: (0, 0)),
                pl.BlockSpec((C_out, 1), lambda b, j, k: (0, 0)),
            ],
            out_specs=pl.BlockSpec((1, C_out, tn), lambda b, j, k: (b, 0, j)),
            scratch_shapes=[pltpu.VMEM((C_in, tn), jnp.float32)],
        ),
        compiler_params=pltpu.CompilerParams(
            # (B, j) independent -> megacore shards them across both v7x TCs;
            # k is the reduction (accumulator-resident) axis.
            dimension_semantics=("parallel", "parallel", "arbitrary"),
            vmem_limit_bytes=int(vmem_limit),
        ),
        cost_estimate=cost,
    )(adj, inputs, weight, bias2d)

    return out


def _run_case(key, B, C_in, C_out, N, **kw):
    k1, k2, k3, k4 = jax.random.split(key, 4)
    inputs = jax.random.normal(k1, (B, C_in, N), dtype=jnp.float32)
    adj = jax.random.normal(k2, (B, N, N), dtype=jnp.float32) * 0.1
    # Deterministic Conv1d(C_in, C_out, 1) parameters (synthetic init).
    weight = jax.random.normal(k3, (C_out, C_in), dtype=jnp.float32) * (
        1.0 / math.sqrt(C_in)
    )
    bias = jax.random.normal(k4, (C_out,), dtype=jnp.float32) * 0.01

    out = jax.block_until_ready(gcn_forward(adj, inputs, weight, bias, **kw))
    ref = gcn_reference(adj, inputs, weight, bias)
    assert out.shape == (B, C_out, N), out.shape
    err = float(jnp.max(jnp.abs(out.astype(jnp.float32) - ref)))
    assert err < 2e-5, (B, C_in, C_out, N, err)


if __name__ == "__main__":
    key = jax.random.PRNGKey(0)
    ks = jax.random.split(key, 3)

    # Pallas path, aligned N, multi-block in both j and k (forced small tiles).
    _run_case(ks[0], B=2, C_in=4, C_out=8, N=256, tn=128, tk=128)
    # Pallas path, ragged N: exercises in-kernel contraction-row masking and
    # ragged output blocks (no adj padding, no output slice).
    _run_case(ks[1], B=2, C_in=4, C_out=8, N=200)
    # Tiny-N fast path (module's toy size) dispatches to the XLA reference.
    _run_case(ks[2], B=2, C_in=4, C_out=8, N=16)

    print("KERNEL_OK")
</pallas_src>

<mosaic_0001>
module attributes {stable_mosaic.version = 11 : i64} {
  func.func @_gcn_kernel(%arg0: i32, %arg1: i32, %arg2: i32, %arg3: memref<1x128x128xf32, #tpu.memory_space<vmem>>, %arg4: memref<1x4x128xf32, #tpu.memory_space<vmem>>, %arg5: memref<8x4xf32, #tpu.memory_space<vmem>>, %arg6: memref<8x1xf32, #tpu.memory_space<vmem>>, %arg7: memref<1x8x128xf32, #tpu.memory_space<vmem>>, %arg8: memref<4x128xf32, #tpu.memory_space<vmem>>) attributes {dimension_semantics = [#tpu.dimension_semantics<parallel>, #tpu.dimension_semantics<parallel>, #tpu.dimension_semantics<arbitrary>], iteration_bounds = array<i64: 2, 2, 2>, scalar_prefetch = 0 : i64, scratch_operands = 1 : i64, tpu.core_type = #tpu.core_type<tc>, window_params = [{transform_indices = @transform_0, window_bounds = array<i64: 1, 128, 128>}, {transform_indices = @transform_1, window_bounds = array<i64: 1, 4, 128>}, {pipeline_mode = #tpu.pipeline_mode<synchronous>, transform_indices = @transform_2, window_bounds = array<i64: 8, 4>}, {pipeline_mode = #tpu.pipeline_mode<synchronous>, transform_indices = @transform_3, window_bounds = array<i64: 8, 1>}, {transform_indices = @transform_4, window_bounds = array<i64: 1, 8, 128>}]} {
    %c0_i32 = arith.constant 0 : i32
    %0 = arith.cmpi eq, %arg2, %c0_i32 : i32
    %1 = arith.extui %0 : i1 to i32
    %c0_i32_0 = arith.constant 0 : i32
    %2 = arith.cmpi ne, %1, %c0_i32_0 : i32
    scf.if %2 {
      %cst_11 = arith.constant 0.000000e+00 : f32
      %14 = vector.broadcast %cst_11 : f32 to vector<4x128xf32>
      %c0_12 = arith.constant 0 : index
      %c0_13 = arith.constant 0 : index
      %15 = vector.load %arg8[%c0_12, %c0_13] : memref<4x128xf32, #tpu.memory_space<vmem>>, vector<4x128xf32>
      tpu.vector_store %arg8[%c0_12, %c0_13], %14 {strides = array<i32>} : memref<4x128xf32, #tpu.memory_space<vmem>>, vector<4x128xf32>,
    } else {
    }
    %c0 = arith.constant 0 : index
    %c0_1 = arith.constant 0 : index
    %c0_2 = arith.constant 0 : index
    %3 = vector.load %arg3[%c0, %c0_1, %c0_2] : memref<1x128x128xf32, #tpu.memory_space<vmem>>, vector<1x128x128xf32>
    %4 = vector.shape_cast %3 : vector<1x128x128xf32> to vector<128x128xf32>
    %c0_3 = arith.constant 0 : index
    %c0_4 = arith.constant 0 : index
    %c0_5 = arith.constant 0 : index
    %5 = vector.load %arg4[%c0_3, %c0_4, %c0_5] : memref<1x4x128xf32, #tpu.memory_space<vmem>>, vector<1x4x128xf32>
    %6 = vector.shape_cast %5 : vector<1x4x128xf32> to vector<4x128xf32>
    %c0_6 = arith.constant 0 : index
    %c0_7 = arith.constant 0 : index
    %7 = vector.load %arg8[%c0_6, %c0_7] : memref<4x128xf32, #tpu.memory_space<vmem>>, vector<4x128xf32>
    %cst = arith.constant dense<0.000000e+00> : vector<4x128xf32>
    %8 = tpu.matmul %6, %4, %cst {dimension_numbers = #tpu.dot_dimension_numbers<[1], [0], [0], [1], [0, 0, 1, 1], [], []>, precision = #tpu.contract_precision<fp32>} : vector<4x128xf32>, vector<128x128xf32>, vector<4x128xf32> -> vector<4x128xf32>
    %9 = arith.addf %7, %8 : vector<4x128xf32>
    %c0_8 = arith.constant 0 : index
    %c0_9 = arith.constant 0 : index
    %10 = vector.load %arg8[%c0_8, %c0_9] : memref<4x128xf32, #tpu.memory_space<vmem>>, vector<4x128xf32>
    tpu.vector_store %arg8[%c0_8, %c0_9], %9 {strides = array<i32>} : memref<4x128xf32, #tpu.memory_space<vmem>>, vector<4x128xf32>,
    %c1_i32 = arith.constant 1 : i32
    %11 = arith.cmpi eq, %arg2, %c1_i32 : i32
    %12 = arith.extui %11 : i1 to i32
    %c0_i32_10 = arith.constant 0 : i32
    %13 = arith.cmpi ne, %12, %c0_i32_10 : i32
    scf.if %13 {
      %c0_11 = arith.constant 0 : index
      %c0_12 = arith.constant 0 : index
      %14 = vector.load %arg8[%c0_11, %c0_12] : memref<4x128xf32, #tpu.memory_space<vmem>>, vector<4x128xf32>
      %cst_13 = arith.constant 5.000000e-01 : f32
      %15 = vector.broadcast %cst_13 : f32 to vector<4x128xf32>
      %16 = arith.mulf %15, %14 : vector<4x128xf32>
      %cst_14 = arith.constant 0.707106769 : f32
      %17 = vector.broadcast %cst_14 : f32 to vector<4x128xf32>
      %18 = arith.mulf %14, %17 : vector<4x128xf32>
      %19 = math.erf %18 : vector<4x128xf32>
      %cst_15 = arith.constant 1.000000e+00 : f32
      %20 = vector.broadcast %cst_15 : f32 to vector<4x128xf32>
      %21 = arith.addf %20, %19 : vector<4x128xf32>
      %22 = arith.mulf %16, %21 : vector<4x128xf32>
      %c0_16 = arith.constant 0 : index
      %c0_17 = arith.constant 0 : index
      %23 = vector.load %arg5[%c0_16, %c0_17] : memref<8x4xf32, #tpu.memory_space<vmem>>, vector<8x4xf32>
      %c0_18 = arith.constant 0 : index
      %c0_19 = arith.constant 0 : index
      %24 = vector.load %arg6[%c0_18, %c0_19] : memref<8x1xf32, #tpu.memory_space<vmem>>, vector<8x1xf32>
      %cst_20 = arith.constant dense<0.000000e+00> : vector<8x128xf32>
      %25 = tpu.matmul %23, %22, %cst_20 {dimension_numbers = #tpu.dot_dimension_numbers<[1], [0], [0], [1], [0, 0, 1, 1], [], []>, precision = #tpu.contract_precision<fp32>} : vector<8x4xf32>, vector<4x128xf32>, vector<8x128xf32> -> vector<8x128xf32>
      %26 = vector.broadcast %24 : vector<8x1xf32> to vector<8x128xf32>
      %27 = arith.addf %25, %26 : vector<8x128xf32>
      %cst_21 = arith.constant 5.000000e-01 : f32
      %28 = vector.broadcast %cst_21 : f32 to vector<8x128xf32>
      %29 = arith.mulf %28, %27 : vector<8x128xf32>
      %cst_22 = arith.constant 0.707106769 : f32
      %30 = vector.broadcast %cst_22 : f32 to vector<8x128xf32>
      %31 = arith.mulf %27, %30 : vector<8x128xf32>
      %32 = math.erf %31 : vector<8x128xf32>
      %cst_23 = arith.constant 1.000000e+00 : f32
      %33 = vector.broadcast %cst_23 : f32 to vector<8x128xf32>
      %34 = arith.addf %33, %32 : vector<8x128xf32>
      %35 = arith.mulf %29, %34 : vector<8x128xf32>
      %c0_24 = arith.constant 0 : index
      %c0_25 = arith.constant 0 : index
      %c0_26 = arith.constant 0 : index
      %36 = vector.load %arg7[%c0_24, %c0_25, %c0_26] : memref<1x8x128xf32, #tpu.memory_space<vmem>>, vector<1x8x128xf32>
      %37 = vector.shape_cast %36 : vector<1x8x128xf32> to vector<8x128xf32>
      %38 = vector.shape_cast %35 : vector<8x128xf32> to vector<1x8x128xf32>
      tpu.vector_store %arg7[%c0_24, %c0_25, %c0_26], %38 {strides = array<i32>} : memref<1x8x128xf32, #tpu.memory_space<vmem>>, vector<1x8x128xf32>,
    } else {
    }
    return
  }
  func.func @transform_0(%arg0: i32, %arg1: i32, %arg2: i32) -> (i32, i32, i32) {
    %c0_i32 = arith.constant 0 : i32
    return %arg0, %arg2, %arg1 : i32, i32, i32
  }
  func.func @transform_1(%arg0: i32, %arg1: i32, %arg2: i32) -> (i32, i32, i32) {
    %c0_i32 = arith.constant 0 : i32
    %c0_i32_0 = arith.constant 0 : i32
    return %arg0, %c0_i32, %arg2 : i32, i32, i32
  }
  func.func @transform_2(%arg0: i32, %arg1: i32, %arg2: i32) -> (i32, i32) {
    %c0_i32 = arith.constant 0 : i32
    %c0_i32_0 = arith.constant 0 : i32
    %c0_i32_1 = arith.constant 0 : i32
    return %c0_i32, %c0_i32_0 : i32, i32
  }
  func.func @transform_3(%arg0: i32, %arg1: i32, %arg2: i32) -> (i32, i32) {
    %c0_i32 = arith.constant 0 : i32
    %c0_i32_0 = arith.constant 0 : i32
    %c0_i32_1 = arith.constant 0 : i32
    return %c0_i32, %c0_i32_0 : i32, i32
  }
  func.func @transform_4(%arg0: i32, %arg1: i32, %arg2: i32) -> (i32, i32, i32) {
    %c0_i32 = arith.constant 0 : i32
    %c0_i32_0 = arith.constant 0 : i32
    return %arg0, %c0_i32, %arg1 : i32, i32, i32
  }
}

</mosaic_0001>

<bundles_post_ra>
// kernel: tpu_custom_call.1
= control target key start
LH: loop header
LB: loop body
LE: loop exit
PB: predicated region body
PF: predicated region fallthrough
CT: control target
= control target key end

     0   :  { %s2976_s0 = inlined_call_operand.hbm [shape: f32[2,256,256], index: 0, kind: input, shape index: {}]   ;;  %s2977_s1 = inlined_call_operand.vmem [shape: f32[2,4,256], index: 1, kind: input, shape index: {}]   ;;  %s2978_s2 = inlined_call_operand.vmem [shape: f32[8,4], index: 2, kind: input, shape index: {}]   ;;  %s2979_s3 = inlined_call_operand.vmem [shape: f32[8,1], index: 3, kind: input, shape index: {}]   ;;  %s2980_s4 = inlined_call_operand.hbm [shape: f32[2,8,256], index: 4, kind: output, shape index: {}]  }
   0x1   :  { %2991 = sst [smem:[#allocation16_spill]] %s2980_s4 }
   0x2   :  { %9 = vsyncpa [#allocation4], 0 }
   0x3   :  { %11 = vsyncpa [#allocation4 + $0x1], 0 }
   0x4   :  { %12 = vsyncpa [#allocation5], 0 }
   0x5   :  { %14 = vsyncpa [#allocation5 + $0x1], 0  ;;  %s2417_s15 = smov 0   ;;  %s2419_s16 = smov 0  }
   0x6   :  { %s2421_s17 = smov 0   ;;  %s2423_s18 = smov 0  }
   0x7   :  { %s2425_s19 = smov 0   ;;  %s2427_s20 = smov 0  }
   0x8   :  { %s2429_s21 = smov 0   ;;  %s2431_s22 = smov 0  }
   0x9   :  { %s2433_s23 = smov 0   ;;  %s2435_s24 = smov 0  }
   0xa   :  { %s2437_s25 = smov 0   ;;  %s2439_s26 = smov 0  }
   0xb   :  { %s2441_s27 = smov 0  }
   0xc LB: > { %2992 = sst [smem:[#allocation9_spill]] %s2330_s15  ;;  %s1547_s28 = sadd.s32 4294967295, %s2378_s27   ;;  %s2378_s27 = sphi %s2441_s27, %s20_s27   ;;  %s2374_s26 = sphi %s2439_s26, %s3027_s26   ;;  %s2370_s25 = sphi %s2437_s25, %s3026_s25   ;;  %s2366_s24 = sphi %s2435_s24, %s3014_s24   ;;  %s2362_s23 = sphi %s2433_s23, %s3025_s23   ;;  %s2358_s22 = sphi %s2431_s22, %s3024_s22   ;;  %s2354_s21 = sphi %s2429_s21, %s3013_s21   ;;  %s2350_s20 = sphi %s2427_s20, %s3023_s20   ;;  %s2346_s19 = sphi %s2425_s19, %s3022_s19   ;;  %s2342_s18 = sphi %s2423_s18, %s3021_s18   ;;  %s2338_s17 = sphi %s2421_s17, %s3020_s17   ;;  %s2334_s16 = sphi %s2419_s16, %s3019_s16   ;;  %s2330_s15 = sphi %s2417_s15, %s3018_s15  }
   0xd   : > { %2993 = sst [smem:[#allocation10_spill]] %s2366_s24  ;;  %s1548_s29 = sadd.s32 4294967294, %s2378_s27  }
   0xe   : > { %s32_s30 = sadd.s32 1, %s2366_s24  ;;  %s35_s5 = sadd.s32 1, %s2370_s25 }
   0xf   : > { %p33_p0 = scmp.ge.s32.totalorder %s32_s30, 2  ;;  %s39_s6 = sadd.s32 1, %s2374_s26 }
  0x10   : > { %p57_p1 = scmp.ne.s32.totalorder %s2350_s20, %s2346_s19  ;;  %p58_p2 = scmp.eq.s32.totalorder %s2378_s27, 0 }
  0x11   : > { %s3029_s30 = smov (%p33_p0, %s32_s30), 0  ;;  %s3031_s5 = smov (!%p33_p0, %s35_s5), %s2370_s25 }
  0x12   : > { %2994 = sst [smem:[#allocation11_spill]] %s3029_s30  ;;  %s44_s8 = ssub.s32 %s2366_s24, %s3029_s30 }
  0x13   : > { %p37_p3 = scmp.ge.s32.totalorder %s3031_s5, 2  ;;  %p63_p4 = scmp.ne.s32.totalorder %s2346_s19, %s2342_s18 }
  0x14   : > { %p2498_p5 = por %p58_p2, %p57_p1  ;;  %p64_p6 = scmp.eq.s32.totalorder %s1547_s28, 0 }
  0x15   : > { %s3033_s5 = smov (%p37_p3, %s3031_s5), 0  ;;  %s3035_s6 = smov (!%p37_p3, %s39_s6), %s2374_s26 }
  0x16   : > { %2996 = sst [smem:[#allocation12_spill]] %s3033_s5  ;;  %s46_s10 = ssub.s32 %s2370_s25, %s3033_s5 }
  0x17   : > { %p2507_p7 = por %p64_p6, %p63_p4  ;;  %p41_p8 = scmp.ge.s32.totalorder %s3035_s6, 2 }
  0x18   : > { %s148_s12 = sadd.s32 1, %s2338_s17  ;;  %p158_p9 = scmp.ne.s32.totalorder %s2338_s17, %s2334_s16 }
  0x19   : > { %p159_p10 = scmp.eq.s32.totalorder %s1547_s28, 7  ;;  %s3037_s6 = smov (%p41_p8, %s3035_s6), 0 }
  0x1a   : > { %2998 = sst [smem:[#allocation13_spill]] %s3037_s6  ;;  %p164_p12 = scmp.ne.s32.totalorder %s2334_s16, %s2330_s15 }
  0x1b   : > { %p2516_p11 = por %p159_p10, %p158_p9  ;;  %s43_s14 = ssub.s32 %s2374_s26, %s3037_s6 }
  0x1c   : > { %p165_p13 = scmp.eq.s32.totalorder %s1548_s29, 7  ;;  %s45_s18 = sor.u32 %s44_s8, %s43_s14 }
  0x1d   : > { %s2999_s13 = scalar_select %p2516_p11, 1, 0 }
  0x1e   : > { %s145_s7 = sor.u32 %s46_s10, %s43_s14  ;;  %s47_s5 = sor.u32 %s46_s10, %s45_s18 }
  0x1f   : > { %3000 = sst [smem:[#allocation14_spill]] %s2999_s13  ;;  %p146_p0 = scmp.eq.s32.totalorder %s145_s7, 0 }
  0x20   : > { %p48_p1 = scmp.eq.s32.totalorder %s47_s5, 0  ;;  %p2524_p2 = por %p165_p13, %p164_p12 }
  0x21   : > { %s2529_s30 = scalar_select %p146_p0, %s2338_s17, %s148_s12  }
  0x22   : > { %s3001_s28 = scalar_select %p2524_p2, 1, 0 }
  0x23   : > { %s3003_s4 = sadd.s32 1, %s2350_s20  ;;  %p2089_p3 = scmp.lt.s32.totalorder %s2378_s27, 8 }
  0x24   : > { %3002 = sst [smem:[#allocation15_spill]] %s3001_s28  ;;  %s191_s15 = sand.u32 1, %s2350_s20  }
  0x25   : > { %s2534_s13 = scalar_select %p48_p1, %s2350_s20, %s3003_s4  }
  0x26   : > { %s1568_s6 = sshll.u32 %s2366_s24, 5  ;;  %s1551_s29 = sshll.u32 %s191_s15, 7 }
  0x27   : > { %s201_s8 = sadd.s32 %s2370_s25, %s1568_s6  ;;  %s1554_s14 = sshll.u32 %s2374_s26, 6 }
  0x28   : > { %s195_s10 = scalar_lea.vmem [#allocation3], %s1551_s29  ;;  %s203_s18 = sadd.s32 %s1554_s14, %s201_s8 }
  0x29   : > { %s206_s7 = sshll.u32 %s195_s10, 4  ;;  %s1555_s5 = sshll.u32 %s203_s18, 7  ;;  %s2541_s7 = int_to_ptr.vmem [resolvable:$true] %s206_s7 }
  0x2a   : > { %p2545_p4 = pnand %p2089_p3, %p2498_p5  ;;  %s2552_s24 = scalar_lea.hbm %s2976_s0, %s1555_s5 }
  0x2b   : > { %s2555_s6 = scalar_lea.sflag [#allocation4], %s191_s15  ;;  %s2210_s29 = scalar_lea.hbm %s2552_s24, 2048 }
  0x2c   : > { %p2211_p8 = scmp.ne.s32.totalorder %s2552_s24, %s2210_s29  ;;  %p2212_p5 = pneg %p2545_p4 }
  0x2d   : > { %s2215_s14 = scalar_lea.hbm %s2976_s0, 16384  ;;  %p2216_p12 = scmp.lt.u32.totalorder %s2552_s24, %s2976_s0 }
  0x2e   : > { %p2213_p9 = pnand %p2212_p5, %p2211_p8  ;;  %p2217_p13 = scmp.lt.u32.totalorder %s2215_s14, %s2210_s29 }
  0x2f   : > { %p2219_p1 = scmp.lt.u32.totalorder %s2210_s29, %s2552_s24 }
  0x30   : > { %p2214_p10 = pneg %p2213_p9  ;;  %p2218_p0 = por %p2217_p13, %p2216_p12 }
  0x32   : > { %p2220_p3 = por %p2219_p1, %p2218_p0 }
  0x34   : > { %p2221_p6 = pnand %p2220_p3, %p2214_p10 }
  0x36   : > { %2224 = shalt.err (!%p2221_p6)
}
  0x37   : > { %s2225_s15 = scalar_lea.vmem %s2541_s7, 2048  ;;  %s2380_s5 = smov [#allocation3]  }
  0x38   : > { %p2226_p8 = scmp.ne.s32.totalorder %s2541_s7, %s2225_s15  ;;  %s2230_s12 = sshll.u32 %s2380_s5, 4  ;;  %s2231_s12 = int_to_ptr.vmem [resolvable:$false] %s2230_s12 }
  0x39   : > { %s2232_s4 = scalar_lea.vmem %s2231_s12, 4096  ;;  %p2233_p11 = scmp.lt.s32.totalorder %s2541_s7, %s2231_s12 }
  0x3a   : > { %p2228_p9 = pnand %p2226_p8, %p2212_p5  ;;  %p2234_p12 = scmp.lt.s32.totalorder %s2232_s4, %s2225_s15 }
  0x3c   : > { %p2229_p2 = pneg %p2228_p9  ;;  %p2235_p13 = por %p2234_p12, %p2233_p11 }
  0x3e   : > { %p2236_p0 = pnand %p2235_p13, %p2229_p2 }
  0x40   : > { %2239 = shalt.err (!%p2236_p0)
}
  0x41   : > { %s2381_s29 = smov 256   ;;  %s2382_s9 = smov 128  }
  0x42   : > { %s2383_s8 = smov 8   ;;  %p225_p6 = scmp.lt.s32.totalorder %s2378_s27, 9 }
  0x43   : > { %2084 = dma.hbm_to_vmem [thread:$0]  (!%p2545_p4), %s2552_s24, 2048, %s2541_s7, %s2555_s6, %s2381_s29, %s2382_s9, %s2383_s8  }
  0x44   : > { %p3005_p5 = scmp.ge.s32.totalorder %s2378_s27, 1 }
  0x46   : > { %p226_p10 = pnand %p3005_p5, %p225_p6 }
  0x47   : > { %s231_s14 = sand.u32 (!%p226_p10), 1, %s2346_s19  }
  0x48   : > { %229 = sbr.rel (%p226_p10) target bundleno = 724 (0x2d4), region = 36  ;;  %s1557_s10 = sshll.u32 (!%p226_p10), %s231_s14, 7 }
  0x49   : > { %s232_s18 = scalar_lea.sflag (!%p226_p10), [#allocation4], %s231_s14  ;;  %s2587_s15 = scalar_lea.vmem (!%p226_p10), [#allocation3], %s1557_s10 }
  0x4f   : > { %2321 = dma.done.wait (%p2507_p7), %s232_s18, 2048  }
  0x50   : > { %2323 = vsyncadd (%p2507_p7), %s232_s18, 4294965248  ;;  %s265_s24 = sand.u32 1, %s2334_s16   ;;  %p269_p11 = scmp.lt.s32.totalorder %s2362_s23, 1 }
  0x51   : > { %s2597_s28 = sshll.u32 %s265_s24, 3  ;;  %p271_p2 = scmp.lt.s32.totalorder %s2354_s21, 1 }
  0x52   : > { %s270_s7 = scalar_select %p269_p11, %s2362_s23, 1 }
  0x53   : > { %s272_s6 = scalar_select %p271_p2, %s2354_s21, 1 }
  0x54   : > { %s1559_s5 = sshll.u32 %s270_s7, 1  ;;  %s267_s8 = scalar_lea.vmem [#allocation6], %s2597_s28 }
  0x55   : > { %s274_s12 = sadd.s32 %s1559_s5, %s272_s6  ;;  %p1561_p7 = scmp.ne.s32.totalorder %s2354_s21, 0 }
  0x56   : > { %s1560_s4 = sshll.u32 %s274_s12, 2  ;;  %v2384_v0 = vmov (!%p1561_p7), 0.0  }
  0x57   : > { %s2605_s9 = scalar_lea.vmem %s2977_s1, %s1560_s4  ;;  %280 = sbr.rel (%p1561_p7) target bundleno = 94 (0x5e), region = 44  ;;  %281 = vst [vmem:[#allocation2] sm:$0xf] (!%p1561_p7), %v2384_v0 }
  0x5e PF: > { %v282_v1 = vld [vmem:[%s2587_s15] sm:$0xff]  ;;  %v283_v2 = vld [vmem:[%s2587_s15 + $0x8] sm:$0xff]  ;;  %v284_v3 = vld [vmem:[%s2587_s15 + $0x10] sm:$0xff]  ;;  %v2385_v4 = vmov 0.0|0.0   ;;  %vm2386_vm0 = vmmov 0   ;;  %v2387_v15 = vmov 0.0  }
  0x5f   : > { %1923 = vmatprep.subr.bf16.mxu0 %v2385_v4  ;;  %v301_v5 = vand.u32 4294901760, %v282_v1  ;;  %v304_v6 = vand.u32 4294901760, %v283_v2  ;;  %v285_v7 = vld [vmem:[%s2587_s15 + $0x18] sm:$0xff]  ;;  %v307_v8 = vand.u32 4294901760, %v284_v3  ;;  %1947 = vmatprep.subr.bf16.mxu1 %v2385_v4  ;;  %v286_v9 = vld [vmem:[%s2587_s15 + $0x20] sm:$0xff]  ;;  %v287_v10 = vld [vmem:[%s2587_s15 + $0x28] sm:$0xff] }
  0x60   : > { %v310_v11 = vand.u32 4294901760, %v285_v7  ;;  %v313_v12 = vand.u32 4294901760, %v286_v9  ;;  %v316_v13 = vand.u32 4294901760, %v287_v10  ;;  %v288_v14 = vld [vmem:[%s2587_s15 + $0x30] sm:$0xff]  ;;  %1715 = vmatprep.mubr.msk.f32.mxu0 %vm2386_vm0, %v2387_v15  ;;  %1750 = vmatprep.mubr.msk.f32.mxu1 %vm2386_vm0, %v2387_v15  ;;  %v289_v20 = vld [vmem:[%s2587_s15 + $0x38] sm:$0xff]  ;;  %v290_v21 = vld [vmem:[%s2587_s15 + $0x40] sm:$0xff] }
  0x61   : > { %v2622_v16 = vpack.c.bf16 %v304_v6, %v301_v5  ;;  %v2624_v17 = vsub.f32 %v282_v1, %v301_v5  ;;  %v2626_v18 = vsub.f32 %v283_v2, %v304_v6  ;;  %v2628_v19 = vsub.f32 %v284_v3, %v307_v8  ;;  %v291_v28 = vld [vmem:[%s2587_s15 + $0x48] sm:$0xff]  ;;  %v292_v41 = vld [vmem:[%s2587_s15 + $0x50] sm:$0xff]  ;;  %v293_v42 = vld [vmem:[%s2587_s15 + $0x58] sm:$0xff]  ;;  %p1562_p4 = scmp.ne.s32.totalorder %s2354_s21, 1 }
  0x62   : > { %v2632_v22 = vpack.c.bf16 %v310_v11, %v307_v8  ;;  %v2634_v23 = vsub.f32 %v285_v7, %v310_v11  ;;  %v2637_v24 = vsub.f32 %v286_v9, %v313_v12  ;;  %v319_v27 = vand.u32 4294901760, %v288_v14  ;;  %v294_v51 = vld [vmem:[%s2587_s15 + $0x60] sm:$0xff]  ;;  %v295_v60 = vld [vmem:[%s2587_s15 + $0x68] sm:$0xff]  ;;  %v296_v1 = vld [vmem:[%s2587_s15 + $0x70] sm:$0xff] }
  0x63   : > { %1925 = vmatpush3.bf16.msra.mxu0 %v2622_v16  ;;  %v394_v25 = vand.u32 4294901760, %v2624_v17  ;;  %v401_v26 = vand.u32 4294901760, %v2626_v18  ;;  %v322_v29 = vand.u32 4294901760, %v289_v20  ;;  %v408_v30 = vand.u32 4294901760, %v2628_v19  ;;  %v297_v7 = vld [vmem:[%s2587_s15 + $0x78] sm:$0xff] }
  0x64   : > { %1926 = vmatprep.subr.bf16.mxu0 %v2385_v4  ;;  %v415_v31 = vand.u32 4294901760, %v2634_v23  ;;  %v325_v32 = vand.u32 4294901760, %v290_v21  ;;  %v2645_v33 = vsub.f32 %v287_v10, %v316_v13  ;;  %v2653_v36 = vsub.f32 %v288_v14, %v319_v27 }
  0x65   : > { %v395_v34 = vsub.f32 %v2624_v17, %v394_v25  ;;  %v402_v35 = vsub.f32 %v2626_v18, %v401_v26  ;;  %v2655_v37 = vsub.f32 %v289_v20, %v322_v29  ;;  %v409_v38 = vsub.f32 %v2628_v19, %v408_v30 }
  0x66   : > { %v416_v39 = vsub.f32 %v2634_v23, %v415_v31  ;;  %v328_v40 = vand.u32 4294901760, %v291_v28  ;;  %v2666_v43 = vpack.c.bf16 %v316_v13, %v313_v12  ;;  %v2668_v46 = vpack.c.bf16 %v322_v29, %v319_v27 }
  0x67   : > { %1928 = vmatpush3.bf16.msra.mxu0 %v2632_v22  ;;  %v396_v44 = vand.u32 4294901760, %v395_v34  ;;  %v403_v45 = vand.u32 4294901760, %v402_v35  ;;  %v410_v47 = vand.u32 4294901760, %v409_v38  ;;  %v2671_v49 = vsub.f32 %v290_v21, %v325_v32 }
  0x68   : > { %1929 = vmatprep.subr.bf16.mxu0 %v2385_v4  ;;  %v417_v48 = vand.u32 4294901760, %v416_v39  ;;  %v422_v50 = vand.u32 4294901760, %v2637_v24  ;;  %v429_v53 = vand.u32 4294901760, %v2645_v33  ;;  %v331_v54 = vand.u32 4294901760, %v292_v41 }
  0x69   : > { %v1948_v52 = vpack.c.bf16 %v403_v45, %v396_v44  ;;  %v334_v55 = vand.u32 4294901760, %v293_v42  ;;  %v2676_v56 = vsub.f32 %v291_v28, %v328_v40  ;;  %v436_v58 = vand.u32 4294901760, %v2653_v36 }
  0x6a   : > { %v423_v57 = vsub.f32 %v2637_v24, %v422_v50  ;;  %v443_v59 = vand.u32 4294901760, %v2655_v37  ;;  %v1951_v61 = vpack.c.bf16 %v417_v48, %v410_v47  ;;  %v2685_v62 = vpack.c.bf16 %v328_v40, %v325_v32  ;;  %v298_v32 = vld [vmem:[%s2605_s9] sm:$0xf] }
  0x6b   : > { %1931 = vmatpush3.bf16.msra.mxu0 %v2666_v43  ;;  %1949 = vmatpush3.bf16.msra.mxu1 %v1948_v52  ;;  %v430_v63 = vsub.f32 %v2645_v33, %v429_v53  ;;  %v337_v0 = vand.u32 4294901760, %v294_v51  ;;  %v2693_v3 = vsub.f32 %v292_v41, %v331_v54  ;;  %v437_v5 = vsub.f32 %v2653_v36, %v436_v58 }
  0x6c   : > { %1932 = vmatprep.subr.bf16.mxu0 %v2385_v4  ;;  %1950 = vmatprep.subr.bf16.mxu1 %v2385_v4  ;;  %v424_v2 = vand.u32 4294901760, %v423_v57  ;;  %v444_v6 = vsub.f32 %v2655_v37, %v443_v59  ;;  %v2702_v9 = vsub.f32 %v293_v42, %v334_v55  ;;  %v340_v10 = vand.u32 4294901760, %v295_v60 }
  0x6d   : > { %v431_v8 = vand.u32 4294901760, %v430_v63  ;;  %v450_v11 = vand.u32 4294901760, %v2671_v49  ;;  %v438_v12 = vand.u32 4294901760, %v437_v5  ;;  %v457_v14 = vand.u32 4294901760, %v2676_v56 }
  0x6e   : > { %v445_v13 = vand.u32 4294901760, %v444_v6  ;;  %v343_v20 = vand.u32 4294901760, %v296_v1  ;;  %v2707_v27 = vsub.f32 %v294_v51, %v337_v0  ;;  %v2709_v28 = vsub.f32 %v295_v60, %v340_v10 }
  0x6f   : > { %1934 = vmatpush3.bf16.msra.mxu0 %v2668_v46  ;;  %1952 = vmatpush3.bf16.msra.mxu1 %v1951_v61  ;;  %v1954_v21 = vpack.c.bf16 %v431_v8, %v424_v2  ;;  %v346_v29 = vand.u32 4294901760, %v297_v7  ;;  %v451_v34 = vsub.f32 %v2671_v49, %v450_v11  ;;  %v458_v35 = vsub.f32 %v2676_v56, %v457_v14 }
  0x70   : > { %1935 = vmatprep.subr.bf16.mxu0 %v2385_v4  ;;  %1953 = vmatprep.subr.bf16.mxu1 %v2385_v4  ;;  %v464_v38 = vand.u32 4294901760, %v2693_v3  ;;  %v2721_v39 = vpack.c.bf16 %v334_v55, %v331_v54  ;;  %v1957_v40 = vpack.c.bf16 %v445_v13, %v438_v12  ;;  %v2723_v41 = vsub.f32 %v296_v1, %v343_v20 }
  0x71   : > { %v471_v42 = vand.u32 4294901760, %v2702_v9  ;;  %v452_v44 = vand.u32 4294901760, %v451_v34  ;;  %v459_v45 = vand.u32 4294901760, %v458_v35  ;;  %v2729_v48 = vand.u32 4294901760, %v298_v32 }
  0x72   : > { %v465_v47 = vsub.f32 %v2693_v3, %v464_v38  ;;  %v2732_v51 = vsub.f32 %v297_v7, %v346_v29  ;;  %v478_v54 = vand.u32 4294901760, %v2707_v27  ;;  %v485_v55 = vand.u32 4294901760, %v2709_v28 }
  0x73   : > { %1937 = vmatpush3.bf16.msra.mxu0 %v2685_v62  ;;  %1955 = vmatpush3.bf16.msra.mxu1 %v1954_v21  ;;  %v472_v52 = vsub.f32 %v2702_v9, %v471_v42  ;;  %v2742_v57 = vsub.f32 %v298_v32, %v2729_v48  ;;  %v2744_v60 = vpack.c.bf16 %v340_v10, %v337_v0  ;;  %v492_v2 = vand.u32 4294901760, %v2723_v41 }
  0x74   : > { %1938 = vmatprep.subr.bf16.mxu0 %v2385_v4  ;;  %1956 = vmatprep.subr.bf16.mxu1 %v2385_v4  ;;  %v1960_v61 = vpack.c.bf16 %v459_v45, %v452_v44  ;;  %v466_v63 = vand.u32 4294901760, %v465_v47  ;;  %v479_v6 = vsub.f32 %v2707_v27, %v478_v54  ;;  %v486_v7 = vsub.f32 %v2709_v28, %v485_v55 }
  0x75   : > { %v383_v1 = vand.u32 4294901760, %v2742_v57  ;;  %v473_v5 = vand.u32 4294901760, %v472_v52  ;;  %v499_v0 = vand.u32 4294901760, %v2732_v51  ;;  %v2758_v8 = vpack.c.bf16 %v346_v29, %v343_v20 }
  0x76   : > { %v493_v12 = vsub.f32 %v2723_v41, %v492_v2  ;;  %v480_v21 = vand.u32 4294901760, %v479_v6  ;;  %v487_v32 = vand.u32 4294901760, %v486_v7  ;;  %v1972_v35 = vpack.c.bf16 %v2626_v18, %v2624_v17 }
  0x77   : > { %1940 = vmatpush3.bf16.msra.mxu0 %v2721_v39  ;;  %1958 = vmatpush3.bf16.msra.mxu1 %v1957_v40  ;;  %v384_v10 = vsub.f32 %v2742_v57, %v383_v1  ;;  %v1963_v13 = vpack.c.bf16 %v473_v5, %v466_v63  ;;  %v500_v34 = vsub.f32 %v2732_v51, %v499_v0  ;;  %vm960_vm1 = vcmask (!%p1562_p4), 31744  }
  0x78   : > { %1941 = vmatprep.subr.bf16.mxu0 %v2385_v4  ;;  %1959 = vmatprep.subr.bf16.mxu1 %v2385_v4  ;;  %v1966_v29 = vpack.c.bf16 %v487_v32, %v480_v21  ;;  %v494_v40 = vand.u32 4294901760, %v493_v12  ;;  %v1975_v47 = vpack.c.bf16 %v2634_v23, %v2628_v19  ;;  %v1978_v52 = vpack.c.bf16 %v2645_v33, %v2637_v24 }
  0x79   : > { %v385_v20 = vand.u32 4294901760, %v384_v10  ;;  %v501_v44 = vand.u32 4294901760, %v500_v34  ;;  %v1984_v63 = vpack.c.bf16 %v2676_v56, %v2671_v49  ;;  %v1987_v5 = vpack.c.bf16 %v2702_v9, %v2693_v3  ;;  %v299_v56 = vld [vmem:[#allocation2] sm:$0xf] }
  0x7a   : > { %v1990_v6 = vpack.c.bf16 %v2709_v28, %v2707_v27  ;;  %v1993_v7 = vpack.c.bf16 %v2732_v51, %v2723_v41  ;;  %v2020_v10 = vpack.c.bf16 %v401_v26, %v394_v25  ;;  %v2023_v12 = vpack.c.bf16 %v415_v31, %v408_v30  ;;  %v953_v9 = vld [vmem:[%s2978_s2] sm:$0xff] (!%p1562_p4) }
  0x7b   : > { %1943 = vmatpush3.bf16.msra.mxu0 %v2744_v60  ;;  %1961 = vmatpush3.bf16.msra.mxu1 %v1960_v61  ;;  %v1969_v45 = vpack.c.bf16 %v501_v44, %v494_v40  ;;  %v1981_v61 = vpack.c.bf16 %v2655_v37, %v2653_v36  ;;  %v2026_v17 = vpack.c.bf16 %v429_v53, %v422_v50  ;;  %v954_v27 = vld [vmem:[%s2979_s3] sm:$0xff] (!%p1562_p4)  ;;  %vm2389_vm2 = vmmov (!%p1562_p4), 0  }
  0x7c   : > { %1944 = vmatprep.subr.bf16.mxu0 %v2385_v4  ;;  %1962 = vmatprep.subr.bf16.mxu1 %v2385_v4  ;;  %v2029_v18 = vpack.c.bf16 %v443_v59, %v436_v58  ;;  %v2038_v19 = vpack.c.bf16 %v485_v55, %v478_v54  ;;  %v962_v28 = vsel (!%p1562_p4), %vm960_vm1, %v953_v9, 0  ;;  %vm964_vm3 = vcmask (!%p1562_p4), 1043456  }
  0x7f   : > { %1946 = vmatpush3.bf16.msra.mxu0 %v2758_v8  ;;  %1964 = vmatpush3.bf16.msra.mxu1 %v1963_v13 }
  0x80   : > { %1965 = vmatprep.subr.bf16.mxu1 %v2385_v4  ;;  %1971 = vmatprep.subr.bf16.mxu0 %v2385_v4 }
  0x82   : > { %1716 = vmatmul.mubr.f32.vlgmr.msra.gmra.mrb[0].mxu0 %v385_v20 }
  0x83   : > { %1967 = vmatpush3.bf16.msra.mxu1 %v1966_v29  ;;  %1973 = vmatpush3.bf16.msra.mxu0 %v1972_v35 }
  0x84   : > { %1968 = vmatprep.subr.bf16.mxu1 %v2385_v4  ;;  %1974 = vmatprep.subr.bf16.mxu0 %v2385_v4 }
  0x85   : > { %1785 = vmatprep.mubr.msk.f32.mxu0 %vm2386_vm0, %v2387_v15 }
  0x87   : > { %1970 = vmatpush3.bf16.msra.mxu1 %v1969_v45  ;;  %1976 = vmatpush3.bf16.msra.mxu0 %v1975_v47 }
  0x88   : > { %1977 = vmatprep.subr.bf16.mxu0 %v2385_v4  ;;  %1995 = vmatprep.subr.bf16.mxu1 %v2385_v4 }
  0x8a   : > { %1751 = vmatmul.mubr.f32.vlgmr.msra.gmra.mrb[0].mxu1 %v2729_v48 }
  0x8b   : > { %1979 = vmatpush3.bf16.msra.mxu0 %v1978_v52  ;;  %1997 = vmatpush3.bf16.msra.mxu1 %v2622_v16 }
  0x8c   : > { %1980 = vmatprep.subr.bf16.mxu0 %v2385_v4  ;;  %1998 = vmatprep.subr.bf16.mxu1 %v2385_v4 }
  0x8d   : > { %1820 = vmatprep.mubr.msk.f32.mxu1 %vm2386_vm0, %v2387_v15 }
  0x8f   : > { %1982 = vmatpush3.bf16.msra.mxu0 %v1981_v61  ;;  %2000 = vmatpush3.bf16.msra.mxu1 %v2632_v22 }
  0x90   : > { %1983 = vmatprep.subr.bf16.mxu0 %v2385_v4  ;;  %2001 = vmatprep.subr.bf16.mxu1 %v2385_v4 }
  0x93   : > { %1985 = vmatpush3.bf16.msra.mxu0 %v1984_v63  ;;  %2003 = vmatpush3.bf16.msra.mxu1 %v2666_v43 }
  0x94   : > { %1986 = vmatprep.subr.bf16.mxu0 %v2385_v4  ;;  %2004 = vmatprep.subr.bf16.mxu1 %v2385_v4 }
  0x97   : > { %1988 = vmatpush3.bf16.msra.mxu0 %v1987_v5  ;;  %2006 = vmatpush3.bf16.msra.mxu1 %v2668_v46 }
  0x98   : > { %1989 = vmatprep.subr.bf16.mxu0 %v2385_v4  ;;  %2007 = vmatprep.subr.bf16.mxu1 %v2385_v4 }
  0x9b   : > { %1991 = vmatpush3.bf16.msra.mxu0 %v1990_v6  ;;  %2009 = vmatpush3.bf16.msra.mxu1 %v2685_v62 }
  0x9c   : > { %1992 = vmatprep.subr.bf16.mxu0 %v2385_v4  ;;  %2010 = vmatprep.subr.bf16.mxu1 %v2385_v4 }
  0x9f   : > { %1994 = vmatpush3.bf16.msra.mxu0 %v1993_v7  ;;  %2012 = vmatpush3.bf16.msra.mxu1 %v2721_v39 }
  0xa0   : > { %2013 = vmatprep.subr.bf16.mxu1 %v2385_v4  ;;  %2019 = vmatprep.subr.bf16.mxu0 %v2385_v4 }
  0xa2   : > { %1786 = vmatmul.mubr.f32.vlgmr.msra.gmra.mrb[2].mxu0 %v2742_v57 }
  0xa3   : > { %2015 = vmatpush3.bf16.msra.mxu1 %v2744_v60  ;;  %2021 = vmatpush3.bf16.msra.mxu0 %v2020_v10 }
  0xa4   : > { %2016 = vmatprep.subr.bf16.mxu1 %v2385_v4  ;;  %2022 = vmatprep.subr.bf16.mxu0 %v2385_v4 }
  0xa5   : > { %1855 = vmatprep.mubr.msk.f32.mxu0 %vm2386_vm0, %v2387_v15 }
  0xa7   : > { %2018 = vmatpush3.bf16.msra.mxu1 %v2758_v8  ;;  %2024 = vmatpush3.bf16.msra.mxu0 %v2023_v12 }
  0xa8   : > { %2025 = vmatprep.subr.bf16.mxu0 %v2385_v4  ;;  %2043 = vmatprep.subr.bf16.mxu1 %v2385_v4 }
  0xaa   : > { %1821 = vmatmul.mubr.f32.vlgmr.msra.gmra.mrb[2].mxu1 %v383_v1 }
  0xab   : > { %2027 = vmatpush3.bf16.msra.mxu0 %v2026_v17  ;;  %2045 = vmatpush3.bf16.msra.mxu1 %v2622_v16  ;;  %v2032_v16 = vpack.c.bf16 %v457_v14, %v450_v11  ;;  %v2388_v11 = vmov (!%p1562_p4), 0.0  }
  0xac   : > { %2028 = vmatprep.subr.bf16.mxu0 %v2385_v4  ;;  %2046 = vmatprep.subr.bf16.mxu1 %v2385_v4 }
  0xad   : > { %1890 = vmatprep.mubr.msk.f32.mxu1 %vm2386_vm0, %v2387_v15  ;;  %v2035_v15 = vpack.c.bf16 %v471_v42, %v464_v38  ;;  %v1034_v38 = vand.u32 (!%p1562_p4), 4294901760, %v962_v28 }
  0xaf   : > { %2030 = vmatpush3.bf16.msra.mxu0 %v2029_v18  ;;  %2048 = vmatpush3.bf16.msra.mxu1 %v2632_v22  ;;  %v2041_v22 = vpack.c.bf16 %v499_v0, %v492_v2  ;;  %v1035_v41 = vsub.f32 (!%p1562_p4), %v962_v28, %v1034_v38 }
  0xb0   : > { %2031 = vmatprep.subr.bf16.mxu0 %v2385_v4  ;;  %2049 = vmatprep.subr.bf16.mxu1 %v2385_v4 }
  0xb1   : > { %v1036_v42 = vand.u32 (!%p1562_p4), 4294901760, %v1035_v41 }
  0xb3   : > { %2033 = vmatpush3.bf16.msra.mxu0 %v2032_v16  ;;  %2051 = vmatpush3.bf16.msra.mxu1 %v2666_v43  ;;  %v1037_v55 = vsub.f32 (!%p1562_p4), %v1035_v41, %v1036_v42 }
  0xb4   : > { %2034 = vmatprep.subr.bf16.mxu0 %v2385_v4  ;;  %2052 = vmatprep.subr.bf16.mxu1 %v2385_v4 }
  0xb5   : > { %v1038_v1 = vand.u32 (!%p1562_p4), 4294901760, %v1037_v55 }
  0xb7   : > { %2036 = vmatpush3.bf16.msra.mxu0 %v2035_v15  ;;  %2054 = vmatpush3.bf16.msra.mxu1 %v2668_v46 }
  0xb8   : > { %2037 = vmatprep.subr.bf16.mxu0 %v2385_v4  ;;  %2055 = vmatprep.subr.bf16.mxu1 %v2385_v4 }
  0xbb   : > { %2039 = vmatpush3.bf16.msra.mxu0 %v2038_v19  ;;  %2057 = vmatpush3.bf16.msra.mxu1 %v2685_v62 }
  0xbc   : > { %2040 = vmatprep.subr.bf16.mxu0 %v2385_v4  ;;  %2058 = vmatprep.subr.bf16.mxu1 %v2385_v4 }
  0xbf   : > { %2042 = vmatpush3.bf16.msra.mxu0 %v2041_v22  ;;  %2060 = vmatpush3.bf16.msra.mxu1 %v2721_v39  ;;  %v2390_v39 = vmov (!%p1562_p4), 0  }
  0xc0   : > { %2061 = vmatprep.subr.bf16.mxu1 %v2385_v4  ;;  %1908 = vmatprep.subr.mxu0 (!%p1562_p4), %v2388_v11 }
  0xc1   : > { %2205 = vset.pattern.permute.xlu0 (!%p1562_p4), %v2390_v39 }
  0xc2   : > { %1856 = vmatmul.mubr.f32.vlgmr.msra.gmra.mrb[4].mxu0 %v2729_v48  ;;  %957 = vperm.xlu0 (!%p1562_p4), %2205, %v954_v27  }
  0xc3   : > { %2063 = vmatpush3.bf16.msra.mxu1 %v2744_v60  ;;  %1910 = vmatprep.mubr.msk.f32.mxu0 (!%p1562_p4), %vm2389_vm2, %v2388_v11 }
  0xc4   : > { %2064 = vmatprep.subr.bf16.mxu1 %v2385_v4 }
  0xc7   : > { %2066 = vmatpush3.bf16.msra.mxu1 %v2758_v8 }
  0xc8   : > { %1893 = vmatprep.subr.mxu1 (!%p1562_p4), %v2388_v11 }
  0xca   : > { %1891 = vmatmul.mubr.f32.vlgmr.msra.gmra.mrb[4].mxu1 %v2729_v48 }
  0xcb   : > { %1895 = vmatprep.mubr.msk.f32.mxu1 (!%p1562_p4), %vm2389_vm2, %v2388_v11 }
 0x141   : > { %v958_v32 = vpop.permute.xlu0 (!%p1562_p4), %957 }
 0x155   : > { %v387_v23 = vpop.f32.mrb[0].mxu0 }
 0x156   : > { %v1717_v24 = vpop.f32.mrb[1].mxu0 }
 0x15d   : > { %v538_v25 = vpop.f32.mrb[0].mxu1 }
 0x15e   : > { %v539_v26 = vadd.f32 %v538_v25, %v387_v23  ;;  %v1752_v30 = vpop.f32.mrb[1].mxu1 }
 0x175   : > { %v642_v31 = vpop.f32.mrb[2].mxu0 }
 0x176   : > { %v643_v33 = vadd.f32 %v642_v31, %v539_v26  ;;  %v1787_v36 = vpop.f32.mrb[3].mxu0 }
 0x17d   : > { %v731_v37 = vpop.f32.mrb[2].mxu1 }
 0x17e   : > { %v732_v43 = vadd.f32 %v731_v37, %v643_v33  ;;  %v1822_v46 = vpop.f32.mrb[3].mxu1 }
 0x195   : > { %v850_v49 = vpop.f32.mrb[4].mxu0 }
 0x196   : > { %v851_v50 = vadd.f32 %v850_v49, %v732_v43  ;;  %v1857_v53 = vpop.f32.mrb[5].mxu0 }
 0x19c   : > { %946 = sbr.rel (%p1562_p4) target bundleno = 697 (0x2b9), region = 48 }
 0x19d   : > { %v937_v4 = vpop.f32.mrb[4].mxu1 }
 0x19e   : > { %v938_v58 = vadd.f32 %v937_v4, %v851_v50  ;;  %v1892_v59 = vpop.f32.mrb[5].mxu1 }
 0x1a0   : > { %v941_v62 = vadd.f32 %v938_v58, %v299_v56 }
 0x1a2   : > { %942 = vst [vmem:[#allocation2] sm:$0xf] %v941_v62 }
 0x1a9   : > { %v947_v3 = vld [vmem:[#allocation2] sm:$0xf] }
 0x1aa   : > { %v949_v14 = vmul.f32 0.70710677, %v947_v3  ;;  %v948_v48 = vmul.f32 0.5, %v947_v3 }
 0x1ac   : > { %2206 = verf.f32 %v949_v14 }
 0x1b6   : > { %v2207_v51 = vpop.eup %2206 }
 0x1b7   : > { %v951_v54 = vadd.f32 1.0, %v2207_v51 }
 0x1b9   : > { %v952_v57 = vmul.f32 %v951_v54, %v948_v48 }
 0x1bb   : > { %v966_v60 = vsel %vm964_vm3, %v952_v57, 0 }
 0x1bc   : > { %v969_v2 = vand.u32 4294901760, %v966_v60 }
 0x1be   : > { %1894 = vmatpush3.msra.mxu1 %v969_v2  ;;  %v1046_v0 = vsub.f32 %v966_v60, %v969_v2  ;;  %1909 = vmatpush3.msra.mxu0 %v969_v2 }
 0x1bf   : > { %1896 = vmatmul.mubr.f32.vlgmr.msra.gmra.mrb[0].mxu1 %v1038_v1  ;;  %1911 = vmatmul.mubr.f32.vlgmr.msra.gmra.mrb[0].mxu0 %v1036_v42 }
 0x1c0   : > { %1898 = vmatprep.subr.mxu1 %v2388_v11  ;;  %1913 = vmatprep.subr.mxu0 %v2388_v11  ;;  %v1047_v8 = vand.u32 4294901760, %v1046_v0 }
 0x1c1   : > { %1900 = vmatprep.mubr.msk.f32.mxu1 %vm2389_vm2, %v2388_v11  ;;  %1915 = vmatprep.mubr.msk.f32.mxu0 %vm2389_vm2, %v2388_v11 }
 0x1c2   : > { %v1048_v13 = vsub.f32 %v1046_v0, %v1047_v8  ;;  %1914 = vmatpush3.msra.mxu0 %v1047_v8 }
 0x1c3   : > { %1918 = vmatprep.subr.mxu0 %v2388_v11 }
 0x1c4   : > { %v1049_v21 = vand.u32 4294901760, %v1048_v13 }
 0x1c6   : > { %1899 = vmatpush3.msra.mxu1 %v1049_v21 }
 0x1c7   : > { %1901 = vmatmul.mubr.f32.vlgmr.msra.gmra.mrb[0].mxu1 %v1034_v38  ;;  %1916 = vmatmul.mubr.f32.vlgmr.msra.gmra.mrb[0].mxu0 %v1034_v38 }
 0x1c8   : > { %1903 = vmatprep.subr.mxu1 %v2388_v11  ;;  %1905 = vmatprep.mubr.msk.f32.mxu1 %vm2389_vm2, %v2388_v11 }
 0x1c9   : > { %1904 = vmatpush3.msra.mxu1 %v1046_v0  ;;  %1919 = vmatpush3.msra.mxu0 %v969_v2 }
 0x1ca   : > { %1920 = vmatprep.mubr.msk.f32.mxu0 %vm2389_vm2, %v2388_v11 }
 0x1cf   : > { %1906 = vmatmul.mubr.f32.vlgmr.msra.gmra.mrb[0].mxu1 %v1035_v41  ;;  %1921 = vmatmul.mubr.f32.vlgmr.msra.gmra.mrb[0].mxu0 %v1034_v38 }
 0x2a2   : > { %v1190_v34 = vpop.f32.mrb[0].mxu1  ;;  %v1410_v20 = vpop.f32.mrb[0].mxu0 }
 0x2a3   : > { %v2067_v29 = vadd.f32 %v1190_v34, %v958_v32  ;;  %v1907_v35 = vpop.f32.mrb[1].mxu1  ;;  %v1922_v40 = vpop.f32.mrb[1].mxu0 }
 0x2a5   : > { %v2068_v44 = vadd.f32 %v2067_v29, %v1410_v20 }
 0x2a7   : > { %v1415_v45 = vmul.f32 0.70710677, %v2068_v44  ;;  %v1414_v52 = vmul.f32 0.5, %v2068_v44 }
 0x2a9   : > { %2208 = verf.f32 %v1415_v45 }
 0x2b3   : > { %v2209_v47 = vpop.eup %2208 }
 0x2b4   : > { %v1417_v61 = vadd.f32 1.0, %v2209_v47 }
 0x2b6   : > { %v1418_v63 = vmul.f32 %v1417_v61, %v1414_v52 }
 0x2b8   : > { %1419 = vst [vmem:[%s267_s8] sm:$0xff] %v1418_v63 }
 0x2b9 PF: > { %s3006_s21 = sld [smem:[#allocation14_spill]]  ;;  %s1564_s7 = sshll.u32 %s2362_s23, 1 }
 0x2ba   : > { %s1432_s6 = sadd.s32 %s2358_s22, %s1564_s7  ;;  %s1436_s5 = sshll.u32 %s267_s8, 4  ;;  %s2904_s5 = int_to_ptr.vmem [resolvable:$true] %s1436_s5 }
 0x2bb   : > { %s1565_s12 = sshll.u32 %s1432_s6, 7  ;;  %s3007_s29 = sld [smem:[#allocation16_spill]] }
 0x2bc   : > { %s1421_s14 = scalar_lea.sflag [#allocation5], %s265_s24  ;;  %s2240_s10 = scalar_lea.vmem %s2904_s5, 128 }
 0x2bd   : > { %p2241_p1 = scmp.ne.s32.totalorder %s2904_s5, %s2240_s10  ;;  %s2391_s22 = smov [#allocation6]  }
 0x2be   : > { %s2244_s23 = sshll.u32 %s2391_s22, 4  ;;  %s2245_s23 = int_to_ptr.vmem [resolvable:$false] %s2244_s23 }
 0x2bf   : > { %p3008_p3 = scmp.ne.s32.totalorder %s3006_s21, 0  ;;  %s2246_s28 = scalar_lea.vmem %s2245_s23, 256 }
 0x2c0   : > { %p2247_p12 = scmp.lt.s32.totalorder %s2904_s5, %s2245_s23  ;;  %p2248_p13 = scmp.lt.s32.totalorder %s2246_s28, %s2240_s10 }
 0x2c1   : > { %s1434_s9 = scalar_lea.hbm %s3007_s29, %s1565_s12  ;;  %p2242_p8 = pnand %p2241_p1, %p3008_p3 }
 0x2c2   : > { %p2249_p0 = por %p2248_p13, %p2247_p12 }
 0x2c3   : > { %p2243_p9 = pneg %p2242_p8 }
 0x2c5   : > { %p2250_p6 = pnand %p2249_p0, %p2243_p9 }
 0x2c7   : > { %2253 = shalt.err (!%p2250_p6)
}
 0x2c8   : > { %s2254_s8 = scalar_lea.hbm %s1434_s9, 128  ;;  %s2258_s15 = scalar_lea.hbm %s3007_s29, 512 }
 0x2c9   : > { %p2255_p5 = scmp.ne.s32.totalorder %s1434_s9, %s2254_s8  ;;  %p2259_p2 = scmp.lt.u32.totalorder %s1434_s9, %s3007_s29 }
 0x2ca   : > { %p2260_p7 = scmp.lt.u32.totalorder %s2258_s15, %s2254_s8  ;;  %p2262_p1 = scmp.lt.u32.totalorder %s2254_s8, %s1434_s9 }
 0x2cb   : > { %p2256_p10 = pnand %p2255_p5, %p3008_p3 }
 0x2cc   : > { %p2261_p4 = por %p2260_p7, %p2259_p2 }
 0x2cd   : > { %p2257_p11 = pneg %p2256_p10 }
 0x2ce   : > { %p2263_p8 = por %p2262_p1, %p2261_p4 }
 0x2d0   : > { %p2264_p9 = pnand %p2263_p8, %p2257_p11 }
 0x2d2   : > { %2267 = shalt.err (!%p2264_p9)
}
 0x2d3   : > { %2079 = dma.vmem_to_hbm [thread:$0]  (%p3008_p3), %s2904_s5, 128, %s1434_s9, %s1421_s14  }
 0x2d4 PF: > { %s3009_s12 = sld [smem:[#allocation9_spill]]  ;;  %s3010_s4 = sld [smem:[#allocation15_spill]] }
 0x2d5   : > { %p2090_p12 = scmp.ge.s32.totalorder %s2378_s27, 2 }
 0x2da   : > { %s1448_s11 = sand.u32 1, %s3009_s12   ;;  %p3011_p13 = scmp.ne.s32.totalorder %s3010_s4, 0 }
 0x2db   : > { %s1449_s10 = scalar_lea.sflag [#allocation5], %s1448_s11 }
 0x2dc   : > { %p2086_p0 = pnand %p2090_p12, %p3011_p13 }
 0x2de   : > { %2325 = dma.done.wait (!%p2086_p0), %s1449_s10, 128  }
 0x2df   : > { %2327 = vsyncadd (!%p2086_p0), %s1449_s10, 4294967168  ;;  %s20_s27 = sadd.s32 1, %s2378_s27   ;;  %s3013_s21 = sld [smem:[#allocation10_spill]] }
 0x2e0   : > { %p2932_p6 = scmp.ge.s32.totalorder %s20_s27, 10   ;;  %s3014_s24 = sld [smem:[#allocation11_spill]] }
 0x2e1   : > { %s3015_s5 = sld [smem:[#allocation12_spill]]  ;;  %s3016_s9 = sld [smem:[#allocation13_spill]] }
 0x2e2   : > { %s3018_s15 = smov %s2334_s16  ;;  %s3019_s16 = smov %s2338_s17 }
 0x2e3   : > { %s3020_s17 = smov %s2529_s30  ;;  %s3021_s18 = smov %s2346_s19 }
 0x2e4   : > { %s3022_s19 = smov %s2350_s20  ;;  %s3023_s20 = smov %s2534_s13 }
 0x2e5   : > { %s3024_s22 = smov %s2370_s25  ;;  %s3025_s23 = smov %s2374_s26 }
 0x2e6   :  { %19 = sbr.rel (!%p2932_p6) target bundleno = 12 (0xc), region = 92 }
 0x2e7   : > { %s3026_s25 = smov %s3015_s5  ;;  %s3027_s26 = smov %s3016_s9 }
 0x2ed   :  { %1454 = vsyncpa [#allocation4], 1 }
 0x2ee   :  { %1456 = vsyncpa [#allocation4 + $0x1], 1 }
 0x2ef   :  { %1457 = vsyncpa [#allocation5], 1 }
 0x2f0   :  { %1459 = vsyncpa [#allocation5 + $0x1], 1 }

</bundles_post_ra>
